<compile_context>
chip_gen: v5e
topology: v5e:2x2
jax: 0.10.0
libtpu: 0.0.40
codegen_flags: <defaults>
</compile_context>

<pallas_src>
import functools

import jax
import jax.numpy as jnp
from jax.experimental import pallas as pl
from jax.experimental.pallas import tpu as pltpu

IN_F, H1, H2, OUT_F = 3, 32, 64, 2
LANE = 128
CHUNK = 512          # in-kernel lane chunk (multiple of 128)


def _cdiv(a, b):
    return -(-a // b)


def _mlp_kernel(xT_ref, w1_ref, b1_ref, w2_ref, b2_ref, w3t_ref, b3_ref, oT_ref):
    # Hoist weight loads / slices out of the chunk loop (JAX does not CSE the
    # broadcasts, and these slices are tiny one-time vreg ops).
    w1 = w1_ref[...]                                  # (32, 3)  f32
    w1c = (w1[:, 0:1], w1[:, 1:2], w1[:, 2:3])        # columns for lane broadcast
    b1 = b1_ref[...]                                  # (32, 1)
    w2 = w2_ref[...].astype(jnp.bfloat16)             # (64, 32) bf16 -> single-pass MXU
    b2 = b2_ref[...]                                  # (64, 1)
    w3t = w3t_ref[...]                                # (64, 2)  (W3 transposed)
    w3c0, w3c1 = w3t[:, 0:1], w3t[:, 1:2]
    b3 = b3_ref[...]                                  # (2, 1)
    b3r0, b3r1 = b3[0:1, :], b3[1:2, :]

    tb = xT_ref.shape[1]                              # static tile width
    for c in range(tb // CHUNK):                      # static, fully unrolled
        lo, hi = c * CHUNK, (c + 1) * CHUNK
        xc = xT_ref[:, lo:hi]                         # (3, CHUNK)

        # -- layer 1 (32x3) on the VPU: 3 broadcast FMAs + ReLU --------------
        h = (w1c[0] * xc[0:1, :]
             + w1c[1] * xc[1:2, :]
             + w1c[2] * xc[2:3, :]
             + b1)
        h = jnp.maximum(h, 0.0)                       # (32, CHUNK) f32

        # -- layer 2 (64x32) on the MXU, bf16 operands, f32 accumulate -------
        h = jnp.dot(w2, h.astype(jnp.bfloat16),
                    preferred_element_type=jnp.float32)
        h = jnp.maximum(h + b2, 0.0)                  # (64, CHUNK) f32

        # -- layer 3 (2x64) on VPU/XLU: broadcast mult + sublane reduction ---
        o0 = jnp.sum(h * w3c0, axis=0, keepdims=True) + b3r0   # (1, CHUNK)
        o1 = jnp.sum(h * w3c1, axis=0, keepdims=True) + b3r1   # (1, CHUNK)
        oT_ref[0:1, lo:hi] = o0.astype(oT_ref.dtype)
        oT_ref[1:2, lo:hi] = o1.astype(oT_ref.dtype)


def _forward_feature_major(xT, params, block_b):
    """xT: (3, B) float32 -> (2, B) float32.  Core pallas_call wrapper."""
    if block_b % CHUNK != 0:
        raise ValueError("block_b must be a multiple of 512")

    w1, b1, w2, b2, w3, b3 = params
    B = xT.shape[1]

    # --- adaptive lane-tile: big tiles, low padding, >=2 (even) grid steps ---
    n_chunks = _cdiv(B, CHUNK)                    # 512-column chunks needed
    max_chunks = max(1, block_b // CHUNK)
    n_steps = _cdiv(n_chunks, max_chunks)
    if n_chunks >= 2:
        n_steps = max(n_steps, 2)                 # keep both v7x TCs fed
        if n_steps % 2:
            n_steps += 1                          # prefer an even step count
        n_steps = min(n_steps, n_chunks)
    chunks_per_tile = _cdiv(n_chunks, n_steps)
    tb = chunks_per_tile * CHUNK
    grid_n = _cdiv(n_chunks, chunks_per_tile)
    b_pad = grid_n * tb

    if b_pad != B:
        xT = jnp.pad(xT, ((0, 0), (0, b_pad - B)))  # zero-pad lanes; sliced off below

    w3t = w3.T                                       # (64, 2): columns lane-broadcastable

    flops = 2 * b_pad * (IN_F * H1 + H1 * H2 + H2 * OUT_F)
    bytes_accessed = 4 * (
        b_pad * (IN_F + OUT_F)
        + IN_F * H1 + H1 + H1 * H2 + H2 + H2 * OUT_F + OUT_F
    )

    # Weights / biases: same (full) block every step -> stay VMEM-resident.
    def resident(shape):
        return pl.BlockSpec(shape, lambda i: (0, 0))

    oT = pl.pallas_call(
        _mlp_kernel,
        out_shape=jax.ShapeDtypeStruct((OUT_F, b_pad), jnp.float32),
        grid_spec=pltpu.PrefetchScalarGridSpec(
            num_scalar_prefetch=0,
            grid=(grid_n,),
            in_specs=[
                pl.BlockSpec((IN_F, tb), lambda i: (0, i)),   # xT tile (lane-dense)
                resident((H1, IN_F)),      # w1 (32, 3)
                resident((H1, 1)),         # b1 (32, 1)
                resident((H2, H1)),        # w2 (64, 32)
                resident((H2, 1)),         # b2 (64, 1)
                resident((H2, OUT_F)),     # w3.T (64, 2)
                resident((OUT_F, 1)),      # b3 (2, 1)
            ],
            out_specs=pl.BlockSpec((OUT_F, tb), lambda i: (0, i)),
        ),
        compiler_params=pltpu.CompilerParams(
            dimension_semantics=("parallel",)),
        cost_estimate=pl.CostEstimate(
            flops=flops, transcendentals=0, bytes_accessed=bytes_accessed),
    )(xT, w1, b1, w2, b2, w3t, b3)

    return oT[:, :B]


@functools.partial(jax.jit, static_argnames=("block_b",))
def generator_forward(x, params, *, block_b=4096):
    """Batch-major API matching PyTorch: x (B, 3) -> (B, 2)."""
    return _forward_feature_major(x.T, params, block_b).T


@functools.partial(jax.jit, static_argnames=("block_b",))
def generator_forward_feature_major(xT, params, *, block_b=4096):
    """Feature-major API: xT (3, B) -> (2, B).  Skips the wrapper transposes."""
    return _forward_feature_major(xT, params, block_b)


def init_params(key):
    """PyTorch Linear-style init (uniform +-1/sqrt(fan_in)).

    Weights in PyTorch layout (out, in); biases as (out, 1) for lane broadcast.
    """
    ks = jax.random.split(key, 6)

    def lin(kw, kb, fan_in, fan_out):
        bound = 1.0 / jnp.sqrt(jnp.float32(fan_in))
        w = jax.random.uniform(kw, (fan_out, fan_in), jnp.float32, -bound, bound)
        b = jax.random.uniform(kb, (fan_out, 1), jnp.float32, -bound, bound)
        return w, b

    w1, b1 = lin(ks[0], ks[1], IN_F, H1)
    w2, b2 = lin(ks[2], ks[3], H1, H2)
    w3, b3 = lin(ks[4], ks[5], H2, OUT_F)
    return (w1, b1, w2, b2, w3, b3)


def reference_forward(x, params):
    """Pure-JAX f32 reference, identical math to PyTorch: x @ W.T + b."""
    w1, b1, w2, b2, w3, b3 = params
    h = jnp.maximum(x @ w1.T + b1[:, 0], 0.0)
    h = jnp.maximum(h @ w2.T + b2[:, 0], 0.0)
    return h @ w3.T + b3[:, 0]


if __name__ == "__main__":
    key = jax.random.PRNGKey(0)
    k_param, k_x1, k_x2 = jax.random.split(key, 3)

    params = init_params(k_param)

    # Small primary test (single-tile path).
    B = 8
    x = jax.random.normal(k_x1, (B, IN_F), dtype=jnp.float32)
    out = jax.block_until_ready(generator_forward(x, params))
    ref = reference_forward(x, params)
    assert out.shape == (B, OUT_F)
    # Tolerance loosened vs f32 reference because layer 2 runs in bf16 on the MXU.
    assert jnp.allclose(out, ref, atol=5e-2, rtol=2e-2), \
        f"max abs err {float(jnp.max(jnp.abs(out - ref)))}"

    # Multi-tile / padding path (grid of 2 steps, B not a multiple of 512).
    B2 = 1300
    x2 = jax.random.normal(k_x2, (B2, IN_F), dtype=jnp.float32)
    out2 = jax.block_until_ready(generator_forward(x2, params))
    ref2 = reference_forward(x2, params)
    assert out2.shape == (B2, OUT_F)
    assert jnp.allclose(out2, ref2, atol=5e-2, rtol=2e-2), \
        f"max abs err {float(jnp.max(jnp.abs(out2 - ref2)))}"

    print("KERNEL_OK")
</pallas_src>

<mosaic_0001>
module attributes {stable_mosaic.version = 11 : i64} {
  func.func @_mlp_kernel(%arg0: i32, %arg1: memref<3x512xf32, #tpu.memory_space<vmem>>, %arg2: memref<32x3xf32, #tpu.memory_space<vmem>>, %arg3: memref<32x1xf32, #tpu.memory_space<vmem>>, %arg4: memref<64x32xf32, #tpu.memory_space<vmem>>, %arg5: memref<64x1xf32, #tpu.memory_space<vmem>>, %arg6: memref<64x2xf32, #tpu.memory_space<vmem>>, %arg7: memref<2x1xf32, #tpu.memory_space<vmem>>, %arg8: memref<2x512xf32, #tpu.memory_space<vmem>>) attributes {dimension_semantics = [#tpu.dimension_semantics<parallel>], iteration_bounds = array<i64: 1>, scalar_prefetch = 0 : i64, scratch_operands = 0 : i64, tpu.core_type = #tpu.core_type<tc>, window_params = [{transform_indices = @transform_0, window_bounds = array<i64: 3, 512>}, {pipeline_mode = #tpu.pipeline_mode<synchronous>, transform_indices = @transform_1, window_bounds = array<i64: 32, 3>}, {pipeline_mode = #tpu.pipeline_mode<synchronous>, transform_indices = @transform_2, window_bounds = array<i64: 32, 1>}, {pipeline_mode = #tpu.pipeline_mode<synchronous>, transform_indices = @transform_3, window_bounds = array<i64: 64, 32>}, {pipeline_mode = #tpu.pipeline_mode<synchronous>, transform_indices = @transform_4, window_bounds = array<i64: 64, 1>}, {pipeline_mode = #tpu.pipeline_mode<synchronous>, transform_indices = @transform_5, window_bounds = array<i64: 64, 2>}, {pipeline_mode = #tpu.pipeline_mode<synchronous>, transform_indices = @transform_6, window_bounds = array<i64: 2, 1>}, {transform_indices = @transform_7, window_bounds = array<i64: 2, 512>}]} {
    %c0 = arith.constant 0 : index
    %c0_0 = arith.constant 0 : index
    %0 = vector.load %arg2[%c0, %c0_0] : memref<32x3xf32, #tpu.memory_space<vmem>>, vector<32x3xf32>
    %1 = vector.extract_strided_slice %0 {offsets = [0, 0], sizes = [32, 1], strides = [1, 1]} : vector<32x3xf32> to vector<32x1xf32>
    %2 = vector.extract_strided_slice %0 {offsets = [0, 1], sizes = [32, 1], strides = [1, 1]} : vector<32x3xf32> to vector<32x1xf32>
    %3 = vector.extract_strided_slice %0 {offsets = [0, 2], sizes = [32, 1], strides = [1, 1]} : vector<32x3xf32> to vector<32x1xf32>
    %c0_1 = arith.constant 0 : index
    %c0_2 = arith.constant 0 : index
    %4 = vector.load %arg3[%c0_1, %c0_2] : memref<32x1xf32, #tpu.memory_space<vmem>>, vector<32x1xf32>
    %c0_3 = arith.constant 0 : index
    %c0_4 = arith.constant 0 : index
    %5 = vector.load %arg4[%c0_3, %c0_4] : memref<64x32xf32, #tpu.memory_space<vmem>>, vector<64x32xf32>
    %6 = arith.truncf %5 : vector<64x32xf32> to vector<64x32xbf16>
    %c0_5 = arith.constant 0 : index
    %c0_6 = arith.constant 0 : index
    %7 = vector.load %arg5[%c0_5, %c0_6] : memref<64x1xf32, #tpu.memory_space<vmem>>, vector<64x1xf32>
    %c0_7 = arith.constant 0 : index
    %c0_8 = arith.constant 0 : index
    %8 = vector.load %arg6[%c0_7, %c0_8] : memref<64x2xf32, #tpu.memory_space<vmem>>, vector<64x2xf32>
    %9 = vector.extract_strided_slice %8 {offsets = [0, 0], sizes = [64, 1], strides = [1, 1]} : vector<64x2xf32> to vector<64x1xf32>
    %10 = vector.extract_strided_slice %8 {offsets = [0, 1], sizes = [64, 1], strides = [1, 1]} : vector<64x2xf32> to vector<64x1xf32>
    %c0_9 = arith.constant 0 : index
    %c0_10 = arith.constant 0 : index
    %11 = vector.load %arg7[%c0_9, %c0_10] : memref<2x1xf32, #tpu.memory_space<vmem>>, vector<2x1xf32>
    %12 = vector.extract_strided_slice %11 {offsets = [0, 0], sizes = [1, 1], strides = [1, 1]} : vector<2x1xf32> to vector<1x1xf32>
    %13 = vector.extract_strided_slice %11 {offsets = [1, 0], sizes = [1, 1], strides = [1, 1]} : vector<2x1xf32> to vector<1x1xf32>
    %c0_11 = arith.constant 0 : index
    %c0_12 = arith.constant 0 : index
    %14 = vector.load %arg1[%c0_11, %c0_12] : memref<3x512xf32, #tpu.memory_space<vmem>>, vector<3x512xf32>
    %15 = vector.extract_strided_slice %14 {offsets = [0, 0], sizes = [1, 512], strides = [1, 1]} : vector<3x512xf32> to vector<1x512xf32>
    %16 = vector.broadcast %1 : vector<32x1xf32> to vector<32x512xf32>
    %17 = vector.broadcast %15 : vector<1x512xf32> to vector<32x512xf32>
    %18 = arith.mulf %16, %17 : vector<32x512xf32>
    %19 = vector.extract_strided_slice %14 {offsets = [1, 0], sizes = [1, 512], strides = [1, 1]} : vector<3x512xf32> to vector<1x512xf32>
    %20 = vector.broadcast %2 : vector<32x1xf32> to vector<32x512xf32>
    %21 = vector.broadcast %19 : vector<1x512xf32> to vector<32x512xf32>
    %22 = arith.mulf %20, %21 : vector<32x512xf32>
    %23 = arith.addf %18, %22 : vector<32x512xf32>
    %24 = vector.extract_strided_slice %14 {offsets = [2, 0], sizes = [1, 512], strides = [1, 1]} : vector<3x512xf32> to vector<1x512xf32>
    %25 = vector.broadcast %3 : vector<32x1xf32> to vector<32x512xf32>
    %26 = vector.broadcast %24 : vector<1x512xf32> to vector<32x512xf32>
    %27 = arith.mulf %25, %26 : vector<32x512xf32>
    %28 = arith.addf %23, %27 : vector<32x512xf32>
    %29 = vector.broadcast %4 : vector<32x1xf32> to vector<32x512xf32>
    %30 = arith.addf %28, %29 : vector<32x512xf32>
    %cst = arith.constant 0.000000e+00 : f32
    %31 = vector.broadcast %cst : f32 to vector<32x512xf32>
    %32 = arith.maximumf %30, %31 : vector<32x512xf32>
    %33 = arith.truncf %32 : vector<32x512xf32> to vector<32x512xbf16>
    %cst_13 = arith.constant dense<0.000000e+00> : vector<64x512xf32>
    %34 = tpu.matmul %6, %33, %cst_13 {dimension_numbers = #tpu.dot_dimension_numbers<[1], [0], [0], [1], [0, 0, 1, 1], [], []>} : vector<64x32xbf16>, vector<32x512xbf16>, vector<64x512xf32> -> vector<64x512xf32>
    %35 = vector.broadcast %7 : vector<64x1xf32> to vector<64x512xf32>
    %36 = arith.addf %34, %35 : vector<64x512xf32>
    %cst_14 = arith.constant 0.000000e+00 : f32
    %37 = vector.broadcast %cst_14 : f32 to vector<64x512xf32>
    %38 = arith.maximumf %36, %37 : vector<64x512xf32>
    %39 = vector.broadcast %9 : vector<64x1xf32> to vector<64x512xf32>
    %40 = arith.mulf %38, %39 : vector<64x512xf32>
    %cst_15 = arith.constant dense<0.000000e+00> : vector<512xf32>
    %41 = vector.multi_reduction <add>, %40, %cst_15 [0] : vector<64x512xf32> to vector<512xf32>
    %42 = vector.shape_cast %41 : vector<512xf32> to vector<1x512xf32>
    %43 = vector.broadcast %12 : vector<1x1xf32> to vector<1x512xf32>
    %44 = arith.addf %42, %43 : vector<1x512xf32>
    %45 = vector.broadcast %10 : vector<64x1xf32> to vector<64x512xf32>
    %46 = arith.mulf %38, %45 : vector<64x512xf32>
    %cst_16 = arith.constant dense<0.000000e+00> : vector<512xf32>
    %47 = vector.multi_reduction <add>, %46, %cst_16 [0] : vector<64x512xf32> to vector<512xf32>
    %48 = vector.shape_cast %47 : vector<512xf32> to vector<1x512xf32>
    %49 = vector.broadcast %13 : vector<1x1xf32> to vector<1x512xf32>
    %50 = arith.addf %48, %49 : vector<1x512xf32>
    %c0_17 = arith.constant 0 : index
    %c0_18 = arith.constant 0 : index
    %51 = vector.load %arg8[%c0_17, %c0_18] : memref<2x512xf32, #tpu.memory_space<vmem>>, vector<1x512xf32>
    tpu.vector_store %arg8[%c0_17, %c0_18], %44 {strides = array<i32>} : memref<2x512xf32, #tpu.memory_space<vmem>>, vector<1x512xf32>,
    %c1 = arith.constant 1 : index
    %c0_19 = arith.constant 0 : index
    %52 = vector.load %arg8[%c1, %c0_19] : memref<2x512xf32, #tpu.memory_space<vmem>>, vector<1x512xf32>
    tpu.vector_store %arg8[%c1, %c0_19], %50 {strides = array<i32>} : memref<2x512xf32, #tpu.memory_space<vmem>>, vector<1x512xf32>,
    return
  }
  func.func @transform_0(%arg0: i32) -> (i32, i32) {
    %c0_i32 = arith.constant 0 : i32
    %c0_i32_0 = arith.constant 0 : i32
    return %c0_i32, %arg0 : i32, i32
  }
  func.func @transform_1(%arg0: i32) -> (i32, i32) {
    %c0_i32 = arith.constant 0 : i32
    %c0_i32_0 = arith.constant 0 : i32
    %c0_i32_1 = arith.constant 0 : i32
    return %c0_i32, %c0_i32_0 : i32, i32
  }
  func.func @transform_2(%arg0: i32) -> (i32, i32) {
    %c0_i32 = arith.constant 0 : i32
    %c0_i32_0 = arith.constant 0 : i32
    %c0_i32_1 = arith.constant 0 : i32
    return %c0_i32, %c0_i32_0 : i32, i32
  }
  func.func @transform_3(%arg0: i32) -> (i32, i32) {
    %c0_i32 = arith.constant 0 : i32
    %c0_i32_0 = arith.constant 0 : i32
    %c0_i32_1 = arith.constant 0 : i32
    return %c0_i32, %c0_i32_0 : i32, i32
  }
  func.func @transform_4(%arg0: i32) -> (i32, i32) {
    %c0_i32 = arith.constant 0 : i32
    %c0_i32_0 = arith.constant 0 : i32
    %c0_i32_1 = arith.constant 0 : i32
    return %c0_i32, %c0_i32_0 : i32, i32
  }
  func.func @transform_5(%arg0: i32) -> (i32, i32) {
    %c0_i32 = arith.constant 0 : i32
    %c0_i32_0 = arith.constant 0 : i32
    %c0_i32_1 = arith.constant 0 : i32
    return %c0_i32, %c0_i32_0 : i32, i32
  }
  func.func @transform_6(%arg0: i32) -> (i32, i32) {
    %c0_i32 = arith.constant 0 : i32
    %c0_i32_0 = arith.constant 0 : i32
    %c0_i32_1 = arith.constant 0 : i32
    return %c0_i32, %c0_i32_0 : i32, i32
  }
  func.func @transform_7(%arg0: i32) -> (i32, i32) {
    %c0_i32 = arith.constant 0 : i32
    %c0_i32_0 = arith.constant 0 : i32
    return %c0_i32, %arg0 : i32, i32
  }
}

</mosaic_0001>

<bundles_post_ra>
// kernel: generator_forward.1
= control target key start
LH: loop header
LB: loop body
LE: loop exit
PB: predicated region body
PF: predicated region fallthrough
CT: control target
= control target key end

     0   :  { %v823_v0 = vmov 2   ;;  %v824_v1 = vmov 1   ;;  %v825_v5 = vmov 0   ;;  %vm336_vm0 = vcmask 261120   ;;  %s1178_s1 = inlined_call_operand.vmem [shape: f32[32,3], index: 1, kind: input, shape index: {}]   ;;  %s1179_s2 = inlined_call_operand.vmem [shape: f32[32,1], index: 2, kind: input, shape index: {}]   ;;  %s1180_s4 = inlined_call_operand.vmem [shape: f32[64,1], index: 4, kind: input, shape index: {}]   ;;  %s1181_s5 = inlined_call_operand.vmem [shape: f32[64,2], index: 5, kind: input, shape index: {}]   ;;  %s1182_s0 = inlined_call_operand.vmem [shape: f32[3,512], index: 0, kind: input, shape index: {}]   ;;  %s1183_s3 = inlined_call_operand.vmem [shape: f32[64,32], index: 3, kind: input, shape index: {}]   ;;  %s1184_s6 = inlined_call_operand.vmem [shape: f32[2,1], index: 6, kind: input, shape index: {}]   ;;  %s1185_s7 = inlined_call_operand.vmem [shape: f32[2,512], index: 7, kind: output, shape index: {}]  }
   0x1   :  { %807 = vset.pattern.permute.xlu2 %v823_v0  ;;  %810 = vset.pattern.permute.xlu0 %v824_v1  ;;  %v29_v2 = vld [vmem:[%s1178_s1 + $0x10] sm:$0xff]  ;;  %v28_v3 = vld [vmem:[%s1178_s1 + $0x8] sm:$0xff]  ;;  %v30_v4 = vld [vmem:[%s1178_s1 + $0x18] sm:$0xff]  ;;  %vm757_vm1 = vcmask 1040384   ;;  %vm759_vm2 = vcmask 1042434   ;;  %vm761_vm3 = vcmask 1041408  }
   0x2   :  { %806 = vset.pattern.permute.xlu1 %v824_v1  ;;  %185 = vperm.xlu2 %807, %v29_v2   ;;  %v27_v6 = vld [vmem:[%s1178_s1] sm:$0xff]  ;;  %v33_v8 = vld [vmem:[%s1179_s2 + $0x10] sm:$0xff]  ;;  %v34_v9 = vld [vmem:[%s1179_s2 + $0x18] sm:$0xff] }
   0x3   :  { %125 = vperm.xlu1 %806, %v29_v2   ;;  %121 = vperm.xlu0 %810, %v28_v3   ;;  %v31_v7 = vld [vmem:[%s1179_s2] sm:$0xff]  ;;  %v32_v10 = vld [vmem:[%s1179_s2 + $0x8] sm:$0xff]  ;;  %v57_v12 = vld [vmem:[%s1181_s5 + $0x10] sm:$0xff] }
   0x4   :  { %v47_v11 = vld [vmem:[%s1180_s4] sm:$0xff]  ;;  %v48_v13 = vld [vmem:[%s1180_s4 + $0x8] sm:$0xff]  ;;  %v49_v14 = vld [vmem:[%s1180_s4 + $0x10] sm:$0xff] }
   0x5   :  { %v51_v15 = vld [vmem:[%s1180_s4 + $0x20] sm:$0xff]  ;;  %v52_v16 = vld [vmem:[%s1180_s4 + $0x28] sm:$0xff]  ;;  %v54_v17 = vld [vmem:[%s1180_s4 + $0x38] sm:$0xff] }
   0x6   :  { %v55_v18 = vld [vmem:[%s1181_s5] sm:$0xff]  ;;  %v58_v19 = vld [vmem:[%s1181_s5 + $0x18] sm:$0xff]  ;;  %v65_v25 = vld [vmem:[%s1182_s0 + $0x8] sm:$0x77] }
   0x7   :  { %v64_v24 = vld [vmem:[%s1182_s0] sm:$0x77]  ;;  %v194_v28 = vperm.slane %v65_v25, 2  ;;  %v195_v29 = vperm.slane %v65_v25, 6  ;;  %v134_v35 = vperm.slane %v65_v25, 1  ;;  %v135_v36 = vperm.slane %v65_v25, 5 }
   0x8   :  { %v192_v26 = vperm.slane %v64_v24, 2  ;;  %v193_v27 = vperm.slane %v64_v24, 6  ;;  %v132_v32 = vperm.slane %v64_v24, 1  ;;  %v133_v34 = vperm.slane %v64_v24, 5 }
   0x9   :  { %v940_v38 = vperm.slane %v194_v28, 2  ;;  %v942_v39 = vperm.slane %v195_v29, 2  ;;  %v88_v41 = vperm.slane %v64_v24, 0  ;;  %v89_v42 = vperm.slane %v64_v24, 4 }
   0xa   :  { %189 = vperm.xlu2 %807, %v30_v4   ;;  %v936_v33 = vperm.slane %v192_v26, 2  ;;  %v938_v37 = vperm.slane %v193_v27, 2  ;;  %v90_v43 = vperm.slane %v65_v25, 0  ;;  %v91_v44 = vperm.slane %v65_v25, 4 }
   0xb   :  { %129 = vperm.xlu1 %806, %v30_v4   ;;  %811 = vset.pattern.permute.xlu0 %v825_v5  ;;  %v140_v45 = vperm.slane %v132_v32, 1  ;;  %v141_v47 = vperm.slane %v133_v34, 1  ;;  %v142_v48 = vperm.slane %v134_v35, 1  ;;  %v143_v49 = vperm.slane %v135_v36, 1 }
   0xc   :  { %78 = vperm.xlu0 %811, %v29_v2   ;;  %v956_v53 = vperm.slane %v88_v41, 0  ;;  %v959_v55 = vperm.slane %v89_v42, 0  ;;  %v961_v56 = vperm.slane %v90_v43, 0  ;;  %v963_v57 = vperm.slane %v91_v44, 0  ;;  %v50_v44 = vld [vmem:[%s1180_s4 + $0x18] sm:$0xff] }
  0x12   :  { %809 = vset.pattern.permute.xlu2 %v824_v1 }
  0x13   :  { %808 = vset.pattern.permute.xlu1 %v825_v5  ;;  %117 = vperm.xlu2 %809, %v27_v6  }
  0x14   :  { %83 = vperm.xlu0 %811, %v30_v4   ;;  %73 = vperm.xlu1 %808, %v28_v3  }
  0x1b   :  { %813 = vset.pattern.permute.xlu2 %v823_v0 }
  0x1c   :  { %812 = vset.pattern.permute.xlu1 %v823_v0  ;;  %68 = vperm.xlu0 %811, %v27_v6  }
  0x1d   :  { %177 = vperm.xlu1 %812, %v27_v6   ;;  %181 = vperm.xlu2 %813, %v28_v3  }
  0x24   :  { %238 = vperm.xlu0 %811, %v31_v7  }
  0x25   :  { %814 = vset.pattern.permute.xlu1 %v825_v5  ;;  %815 = vset.pattern.permute.xlu2 %v825_v5 }
  0x26   :  { %248 = vperm.xlu1 %814, %v33_v8   ;;  %253 = vperm.xlu2 %815, %v34_v9  }
  0x2c   :  { %818 = vset.pattern.permute.xlu0 %v824_v1 }
  0x2d   :  { %639 = vperm.xlu0 %818, %v57_v12  }
  0x2e   :  { %243 = vperm.xlu1 %814, %v32_v10   ;;  %298 = vperm.xlu2 %815, %v47_v11  }
  0x35   :  { %819 = vset.pattern.permute.xlu0 %v825_v5 }
  0x36   :  { %303 = vperm.xlu1 %814, %v48_v13   ;;  %308 = vperm.xlu2 %815, %v49_v14  }
  0x37   :  { %313 = vperm.xlu0 %819, %v50_v44  }
  0x3e   :  { %318 = vperm.xlu1 %814, %v51_v15   ;;  %323 = vperm.xlu2 %815, %v52_v16  }
  0x46   :  { %333 = vperm.xlu1 %814, %v54_v17   ;;  %499 = vperm.xlu2 %815, %v55_v18  }
  0x4e   :  { %509 = vperm.xlu1 %814, %v57_v12   ;;  %514 = vperm.xlu2 %815, %v58_v19  }
  0x56   :  { %816 = vset.pattern.permute.xlu1 %v824_v1  ;;  %817 = vset.pattern.permute.xlu2 %v824_v1 }
  0x57   :  { %631 = vperm.xlu1 %816, %v55_v18  }
  0x5c   :  { %v186_v20 = vpop.permute.xlu2 %185 }
  0x5d   :  { %v945_v46 = vmul.f32 %v936_v33, %v186_v20  ;;  %v948_v50 = vmul.f32 %v938_v37, %v186_v20  ;;  %v951_v51 = vmul.f32 %v940_v38, %v186_v20  ;;  %v954_v52 = vmul.f32 %v942_v39, %v186_v20 }
  0x5f   :  { %643 = vperm.xlu1 %816, %v58_v19  }
  0x64   :  { %v190_v23 = vpop.permute.xlu2 %189 }
  0x65   :  { %v216_v54 = vmul.f32 %v936_v33, %v190_v23  ;;  %v217_v59 = vmul.f32 %v938_v37, %v190_v23  ;;  %v218_v60 = vmul.f32 %v940_v38, %v190_v23  ;;  %v219_v61 = vmul.f32 %v942_v39, %v190_v23 }
  0x6d   :  { %v118_v40 = vpop.permute.xlu2 %117 }
  0x6e   :  { %v968_v62 = vmul.f32 %v140_v45, %v118_v40  ;;  %v970_v0 = vmul.f32 %v141_v47, %v118_v40  ;;  %v972_v2 = vmul.f32 %v142_v48, %v118_v40  ;;  %v974_v3 = vmul.f32 %v143_v49, %v118_v40 }
  0x75   :  { %v126_v21 = vpop.permute.xlu1 %125  ;;  %v928_v22 = vpop.permute.xlu0 %121 }
  0x76   :  { %v152_v4 = vmul.f32 %v140_v45, %v126_v21  ;;  %v153_v6 = vmul.f32 %v141_v47, %v126_v21  ;;  %v154_v7 = vmul.f32 %v142_v48, %v126_v21  ;;  %v155_v8 = vmul.f32 %v143_v49, %v126_v21 }
  0x77   :  { %v148_v9 = vmul.f32 %v140_v45, %v928_v22  ;;  %v182_v14 = vpop.permute.xlu2 %181  ;;  %v149_v24 = vmul.f32 %v141_v47, %v928_v22  ;;  %v150_v25 = vmul.f32 %v142_v48, %v928_v22  ;;  %v151_v26 = vmul.f32 %v143_v49, %v928_v22 }
  0x78   :  { %v208_v42 = vmul.f32 %v936_v33, %v182_v14  ;;  %v994_v43 = vmul.f32 %v940_v38, %v182_v14  ;;  %v997_v22 = vmul.f32 %v942_v39, %v182_v14 }
  0x7d   :  { %v130_v30 = vpop.permute.xlu1 %129 }
  0x7e   :  { %v79_v31 = vpop.permute.xlu0 %78  ;;  %v156_v19 = vmul.f32 %v140_v45, %v130_v30  ;;  %v157_v20 = vmul.f32 %v141_v47, %v130_v30  ;;  %v158_v21 = vmul.f32 %v142_v48, %v130_v30  ;;  %v159_v23 = vmul.f32 %v143_v49, %v130_v30 }
  0x7f   :  { %v108_v15 = vmul.f32 %v956_v53, %v79_v31  ;;  %v109_v16 = vmul.f32 %v959_v55, %v79_v31  ;;  %v110_v17 = vmul.f32 %v961_v56, %v79_v31  ;;  %v111_v18 = vmul.f32 %v963_v57, %v79_v31 }
  0x80   :  { %v991_v30 = vmul.f32 %v938_v37, %v182_v14 }
  0x81   :  { %v168_v36 = vadd.f32 %v152_v4, %v108_v15  ;;  %v169_v40 = vadd.f32 %v153_v6, %v109_v16  ;;  %v170_v31 = vadd.f32 %v154_v7, %v110_v17  ;;  %v171_v41 = vadd.f32 %v155_v8, %v111_v18 }
  0x86   :  { %v74_v58 = vpop.permute.xlu1 %73  ;;  %v84_v63 = vpop.permute.xlu0 %83 }
  0x87   :  { %v112_v10 = vmul.f32 %v956_v53, %v84_v63  ;;  %v113_v11 = vmul.f32 %v959_v55, %v84_v63  ;;  %v114_v12 = vmul.f32 %v961_v56, %v84_v63  ;;  %v115_v13 = vmul.f32 %v963_v57, %v84_v63 }
  0x88   :  { %v104_v27 = vmul.f32 %v956_v53, %v74_v58  ;;  %v105_v45 = vmul.f32 %v959_v55, %v74_v58  ;;  %v106_v47 = vmul.f32 %v961_v56, %v74_v58  ;;  %v107_v48 = vmul.f32 %v963_v57, %v74_v58 }
  0x89   :  { %v172_v28 = vadd.f32 %v156_v19, %v112_v10  ;;  %v173_v29 = vadd.f32 %v157_v20, %v113_v11  ;;  %v174_v32 = vadd.f32 %v158_v21, %v114_v12  ;;  %v175_v34 = vadd.f32 %v159_v23, %v115_v13  ;;  %v53_v23 = vld [vmem:[%s1180_s4 + $0x30] sm:$0xff] }
  0x8a   :  { %v164_v49 = vadd.f32 %v148_v9, %v104_v27  ;;  %v228_v10 = vadd.f32 %v945_v46, %v168_v36  ;;  %v229_v11 = vadd.f32 %v948_v50, %v169_v40  ;;  %v230_v12 = vadd.f32 %v951_v51, %v170_v31  ;;  %328 = vperm.xlu0 %819, %v53_v23  }
  0x8b   :  { %v232_v4 = vadd.f32 %v216_v54, %v172_v28  ;;  %v233_v6 = vadd.f32 %v217_v59, %v173_v29  ;;  %v234_v7 = vadd.f32 %v218_v60, %v174_v32  ;;  %v235_v8 = vadd.f32 %v219_v61, %v175_v34  ;;  %v254_v54 = vpop.permute.xlu2 %253 }
  0x8c   :  { %v231_v13 = vadd.f32 %v954_v52, %v171_v41  ;;  %v165_v59 = vadd.f32 %v149_v24, %v105_v45  ;;  %v166_v60 = vadd.f32 %v150_v25, %v106_v47  ;;  %v167_v61 = vadd.f32 %v151_v26, %v107_v48 }
  0x8d   :  { %v224_v16 = vadd.f32 %v208_v42, %v164_v49  ;;  %v268_v46 = vadd.f32 %v254_v54, %v232_v4  ;;  %v269_v17 = vadd.f32 %v254_v54, %v233_v6  ;;  %v270_v50 = vadd.f32 %v254_v54, %v234_v7  ;;  %v56_v6 = vld [vmem:[%s1181_s5 + $0x8] sm:$0xff] }
  0x8e   :  { %v69_v63 = vpop.permute.xlu0 %68  ;;  %v271_v18 = vadd.f32 %v254_v54, %v235_v8  ;;  %v225_v48 = vadd.f32 %v991_v30, %v165_v59  ;;  %v226_v49 = vadd.f32 %v994_v43, %v166_v60  ;;  %635 = vperm.xlu2 %817, %v56_v6   ;;  %v36_v54 = vld [vmem:[%s1183_s3 + $0x8] sm:$0xff] }
  0x8f   :  { %v178_v35 = vpop.permute.xlu1 %177  ;;  %v100_v14 = vmul.f32 %v956_v53, %v69_v63  ;;  %v101_v15 = vmul.f32 %v959_v55, %v69_v63  ;;  %v102_v58 = vmul.f32 %v961_v56, %v69_v63  ;;  %v103_v9 = vmul.f32 %v963_v57, %v69_v63 }
  0x90   :  { %v204_v51 = vmul.f32 %v936_v33, %v178_v35  ;;  %v205_v52 = vmul.f32 %v938_v37, %v178_v35  ;;  %v206_v53 = vmul.f32 %v940_v38, %v178_v35  ;;  %v207_v55 = vmul.f32 %v942_v39, %v178_v35 }
  0x91   :  { %v160_v56 = vadd.f32 %v968_v62, %v100_v14  ;;  %v161_v57 = vadd.f32 %v970_v0, %v101_v15  ;;  %v162_v19 = vadd.f32 %v972_v2, %v102_v58  ;;  %v163_v20 = vadd.f32 %v974_v3, %v103_v9  ;;  %v35_v9 = vld [vmem:[%s1183_s3] sm:$0xff] }
  0x92   :  { %v284_v38 = vmax.f32 %v268_v46, 0.0  ;;  %v285_v39 = vmax.f32 %v269_v17, 0.0  ;;  %v286_v26 = vmax.f32 %v270_v50, 0.0  ;;  %v287_v62 = vmax.f32 %v271_v18, 0.0  ;;  %504 = vperm.xlu0 %819, %v56_v6   ;;  %v59_v17 = vld [vmem:[%s1181_s5 + $0x20] sm:$0xff]  ;;  %v60_v50 = vld [vmem:[%s1181_s5 + $0x28] sm:$0xff] }
  0x93   :  { %v220_v3 = vadd.f32 %v204_v51, %v160_v56  ;;  %v221_v32 = vadd.f32 %v205_v52, %v161_v57  ;;  %v222_v34 = vadd.f32 %v206_v53, %v162_v19  ;;  %v223_v35 = vadd.f32 %v207_v55, %v163_v20  ;;  %651 = vperm.xlu1 %816, %v60_v50   ;;  %v62_v18 = vld [vmem:[%s1181_s5 + $0x38] sm:$0xff]  ;;  %v37_v51 = vld [vmem:[%s1183_s3 + $0x10] sm:$0xff]  ;;  %v39_v56 = vld [vmem:[%s1183_s3 + $0x20] sm:$0xff]  ;;  %v299_v23 = vpop.permute.xlu2 %298 }
  0x94   :  { %v227_v63 = vadd.f32 %v997_v22, %v167_v61  ;;  %v43_v46 = vpack.c.bf16 %v36_v54, %v35_v9  ;;  %v38_v52 = vld [vmem:[%s1183_s3 + $0x18] sm:$0xff]  ;;  %v61_v55 = vld [vmem:[%s1181_s5 + $0x30] sm:$0xff]  ;;  %v40_v57 = vld [vmem:[%s1183_s3 + $0x28] sm:$0xff] }
  0x95   :  { %v44_v53 = vpack.c.bf16 %v38_v52, %v37_v51  ;;  %v45_v19 = vpack.c.bf16 %v40_v57, %v39_v56  ;;  %v41_v20 = vld [vmem:[%s1183_s3 + $0x30] sm:$0xff] }
  0x96   :  { %v239_v27 = vpop.permute.xlu0 %238  ;;  %647 = vperm.xlu2 %817, %v59_v17  }
  0x97   :  { %v256_v42 = vadd.f32 %v239_v27, %v220_v3  ;;  %v257_v44 = vadd.f32 %v239_v27, %v221_v32  ;;  %v258_v45 = vadd.f32 %v239_v27, %v222_v34  ;;  %v259_v47 = vadd.f32 %v239_v27, %v223_v35 }
  0x98   :  { %v249_v21 = vpop.permute.xlu1 %248 }
  0x99   :  { %v264_v33 = vadd.f32 %v249_v21, %v228_v10  ;;  %v265_v24 = vadd.f32 %v249_v21, %v229_v11  ;;  %v266_v37 = vadd.f32 %v249_v21, %v230_v12  ;;  %v267_v25 = vadd.f32 %v249_v21, %v231_v13 }
  0x9a   :  { %v272_v12 = vmax.f32 %v256_v42, 0.0  ;;  %v273_v13 = vmax.f32 %v257_v44, 0.0  ;;  %v274_v14 = vmax.f32 %v258_v45, 0.0  ;;  %v275_v30 = vmax.f32 %v259_v47, 0.0  ;;  %519 = vperm.xlu0 %819, %v59_v17  }
  0x9b   :  { %v280_v0 = vmax.f32 %v264_v33, 0.0  ;;  %v281_v28 = vmax.f32 %v265_v24, 0.0  ;;  %v282_v2 = vmax.f32 %v266_v37, 0.0  ;;  %v283_v29 = vmax.f32 %v267_v25, 0.0  ;;  %659 = vperm.xlu1 %816, %v62_v18   ;;  %v1088_v24 = vpop.permute.xlu2 %308 }
  0x9d   :  { %v292_v36 = vpack.c.bf16 %v284_v38, %v280_v0  ;;  %v293_v40 = vpack.c.bf16 %v285_v39, %v281_v28  ;;  %v294_v31 = vpack.c.bf16 %v286_v26, %v282_v2  ;;  %v295_v41 = vpack.c.bf16 %v287_v62, %v283_v29 }
  0x9e   :  { %655 = vperm.xlu2 %817, %v61_v55  }
  0x9f   :  { %355 = vmatpush.bf16.msra.mxu0 %v292_v36  ;;  %384 = vmatpush.bf16.msra.mxu1 %v293_v40  ;;  %v1092_v25 = vpop.permute.xlu0 %639 }
  0xa0   :  { %413 = vmatpush.bf16.msra.mxu2 %v294_v31  ;;  %442 = vmatpush.bf16.msra.mxu3 %v295_v41  ;;  %v244_v4 = vpop.permute.xlu1 %243 }
  0xa1   :  { %v260_v7 = vadd.f32 %v244_v4, %v224_v16  ;;  %v261_v8 = vadd.f32 %v244_v4, %v225_v48  ;;  %v262_v10 = vadd.f32 %v244_v4, %v226_v49  ;;  %v263_v11 = vadd.f32 %v244_v4, %v227_v63 }
  0xa2   :  { %524 = vperm.xlu0 %819, %v60_v50  }
  0xa3   :  { %v276_v43 = vmax.f32 %v260_v7, 0.0  ;;  %v277_v15 = vmax.f32 %v261_v8, 0.0  ;;  %v278_v22 = vmax.f32 %v262_v10, 0.0  ;;  %v279_v58 = vmax.f32 %v263_v11, 0.0  ;;  %821 = vset.pattern.permute.xlu1 %v825_v5  ;;  %v1094_v38 = vpop.permute.xlu2 %323 }
  0xa4   :  { %534 = vperm.xlu1 %821, %v62_v18  }
  0xa5   :  { %v288_v59 = vpack.c.bf16 %v276_v43, %v272_v12  ;;  %v289_v60 = vpack.c.bf16 %v277_v15, %v273_v13  ;;  %v290_v61 = vpack.c.bf16 %v278_v22, %v274_v14  ;;  %v291_v16 = vpack.c.bf16 %v279_v58, %v275_v30 }
  0xa6   :  { %820 = vset.pattern.permute.xlu2 %v825_v5  ;;  %v42_v5 = vld [vmem:[%s1183_s3 + $0x38] sm:$0xff] }
  0xa7   :  { %356 = vmatpush.bf16.msra.mxu0 %v288_v59  ;;  %385 = vmatpush.bf16.msra.mxu1 %v289_v60  ;;  %v46_v21 = vpack.c.bf16 %v42_v5, %v41_v20 }
  0xa8   :  { %414 = vmatpush.bf16.msra.mxu2 %v290_v61  ;;  %443 = vmatpush.bf16.msra.mxu3 %v291_v16  ;;  %v304_v33 = vpop.permute.xlu1 %303 }
  0xa9   :  { %529 = vperm.xlu2 %820, %v61_v55   ;;  %v1098_v27 = vpop.permute.xlu0 %313 }
  0xaa   :  { %786 = vmatmul.msk.bf16.vlgmr.msra.gmra.mxu0 %vm336_vm0, %v43_v46  ;;  %790 = vmatmul.msk.bf16.vlgmr.msra.gmra.mxu1 %vm336_vm0, %v43_v46 }
  0xab   :  { %794 = vmatmul.msk.bf16.vlgmr.msra.gmra.mxu2 %vm336_vm0, %v43_v46  ;;  %798 = vmatmul.msk.bf16.vlgmr.msra.gmra.mxu3 %vm336_vm0, %v43_v46  ;;  %v500_v0 = vpop.permute.xlu2 %499 }
  0xac   :  { %822 = vset.pattern.permute.xlu0 %v824_v1  ;;  %v63_v1 = vld [vmem:[%s1184_s6] sm:$0x3] }
  0xb0   :  { %v1090_v37 = vpop.permute.xlu1 %318 }
  0xb1   :  { %623 = vperm.xlu2 %820, %v63_v1  }
  0xb3   :  { %v1104_v35 = vpop.permute.xlu2 %514 }
  0xb8   :  { %v1096_v62 = vpop.permute.xlu1 %333 }
  0xba   :  { %787 = vmatmul.msk.bf16.gmra.mxu0 %vm336_vm0, %v44_v53  ;;  %791 = vmatmul.msk.bf16.gmra.mxu1 %vm336_vm0, %v44_v53 }
  0xbb   :  { %795 = vmatmul.msk.bf16.gmra.mxu2 %vm336_vm0, %v44_v53  ;;  %799 = vmatmul.msk.bf16.gmra.mxu3 %vm336_vm0, %v44_v53 }
  0xc0   :  { %v1100_v32 = vpop.permute.xlu1 %509 }
  0xc9   :  { %v632_v47 = vpop.permute.xlu1 %631 }
  0xca   :  { %788 = vmatmul.msk.bf16.gmra.mxu0 %vm336_vm0, %v45_v19  ;;  %792 = vmatmul.msk.bf16.gmra.mxu1 %vm336_vm0, %v45_v19 }
  0xcb   :  { %796 = vmatmul.msk.bf16.gmra.mxu2 %vm336_vm0, %v45_v19  ;;  %800 = vmatmul.msk.bf16.gmra.mxu3 %vm336_vm0, %v45_v19 }
  0xd1   :  { %v1108_v56 = vpop.permute.xlu1 %643 }
  0xda   :  { %789 = vmatmul.msk.bf16.gmra.mxu0 %vm336_vm0, %v46_v21  ;;  %793 = vmatmul.msk.bf16.gmra.mxu1 %vm336_vm0, %v46_v21 }
  0xdb   :  { %797 = vmatmul.msk.bf16.gmra.mxu2 %vm336_vm0, %v46_v21  ;;  %801 = vmatmul.msk.bf16.gmra.mxu3 %vm336_vm0, %v46_v21 }
  0xe8   :  { %v636_v10 = vpop.permute.xlu2 %635 }
  0xfc   :  { %v1102_v34 = vpop.permute.xlu0 %328 }
 0x104   :  { %v505_v8 = vpop.permute.xlu0 %504 }
 0x127   :  { %v358_v39 = vpop.f32.mrf.mxu0  ;;  %v387_v26 = vpop.f32.mrf.mxu1 }
 0x128   :  { %v359_v42 = vadd.f32 %v358_v39, %v299_v23  ;;  %v388_v44 = vadd.f32 %v387_v26, %v299_v23 }
 0x12a   :  { %v465_v4 = vmax.f32 %v359_v42, 0.0  ;;  %v466_v6 = vmax.f32 %v388_v44, 0.0 }
 0x12c   :  { %v537_v59 = vmul.f32 %v500_v0, %v465_v4  ;;  %v538_v60 = vmul.f32 %v500_v0, %v466_v6  ;;  %v662_v46 = vmul.f32 %v632_v47, %v465_v4  ;;  %v663_v17 = vmul.f32 %v632_v47, %v466_v6 }
 0x12e   :  { %v416_v28 = vpop.f32.mrf.mxu2  ;;  %v445_v2 = vpop.f32.mrf.mxu3 }
 0x12f   :  { %v360_v29 = vpop.f32.mrf.mxu0  ;;  %v389_v3 = vpop.f32.mrf.mxu1  ;;  %v417_v48 = vadd.f32 %v416_v28, %v299_v23  ;;  %v446_v49 = vadd.f32 %v445_v2, %v299_v23 }
 0x130   :  { %v361_v45 = vadd.f32 %v360_v29, %v304_v33  ;;  %v390_v63 = vadd.f32 %v389_v3, %v304_v33 }
 0x131   :  { %v467_v30 = vmax.f32 %v417_v48, 0.0  ;;  %v468_v43 = vmax.f32 %v446_v49, 0.0  ;;  %v1117_v48 = vpop.permute.xlu2 %647 }
 0x132   :  { %v469_v7 = vmax.f32 %v361_v45, 0.0  ;;  %v470_v9 = vmax.f32 %v390_v63, 0.0 }
 0x133   :  { %v539_v51 = vmul.f32 %v500_v0, %v467_v30  ;;  %v664_v52 = vmul.f32 %v632_v47, %v467_v30  ;;  %v540_v53 = vmul.f32 %v500_v0, %v468_v43  ;;  %v665_v5 = vmul.f32 %v632_v47, %v468_v43 }
 0x134   :  { %v541_v61 = vmul.f32 %v505_v8, %v469_v7  ;;  %v666_v50 = vmul.f32 %v636_v10, %v469_v7  ;;  %v542_v57 = vmul.f32 %v505_v8, %v470_v9  ;;  %v667_v19 = vmul.f32 %v636_v10, %v470_v9 }
 0x136   :  { %v418_v36 = vpop.f32.mrf.mxu2  ;;  %v447_v40 = vpop.f32.mrf.mxu3  ;;  %v569_v23 = vadd.f32 %v541_v61, %v537_v59  ;;  %v694_v28 = vadd.f32 %v666_v50, %v662_v46  ;;  %v582_v45 = vadd.f32 %v542_v57, %v538_v60 }
 0x137   :  { %v363_v31 = vpop.f32.mrf.mxu0  ;;  %v392_v41 = vpop.f32.mrf.mxu1  ;;  %v419_v11 = vadd.f32 %v418_v36, %v304_v33  ;;  %v448_v12 = vadd.f32 %v447_v40, %v304_v33 }
 0x138   :  { %v364_v15 = vadd.f32 %v363_v31, %v1088_v24  ;;  %v393_v54 = vadd.f32 %v392_v41, %v1088_v24  ;;  %v520_v60 = vpop.permute.xlu0 %519  ;;  %v1128_v61 = vpop.permute.xlu1 %651 }
 0x139   :  { %v471_v16 = vmax.f32 %v419_v11, 0.0  ;;  %v472_v18 = vmax.f32 %v448_v12, 0.0 }
 0x13a   :  { %v473_v55 = vmax.f32 %v364_v15, 0.0  ;;  %v474_v1 = vmax.f32 %v393_v54, 0.0 }
 0x13b   :  { %v543_v21 = vmul.f32 %v505_v8, %v471_v16  ;;  %v668_v39 = vmul.f32 %v636_v10, %v471_v16  ;;  %v544_v26 = vmul.f32 %v505_v8, %v472_v18  ;;  %v669_v3 = vmul.f32 %v636_v10, %v472_v18 }
 0x13c   :  { %v545_v36 = vmul.f32 %v1100_v32, %v473_v55  ;;  %v670_v40 = vmul.f32 %v1092_v25, %v473_v55  ;;  %v546_v44 = vmul.f32 %v1100_v32, %v474_v1  ;;  %v671_v63 = vmul.f32 %v1092_v25, %v474_v1 }
 0x13d   :  { %v595_v49 = vadd.f32 %v543_v21, %v539_v51  ;;  %v720_v7 = vadd.f32 %v668_v39, %v664_v52  ;;  %v608_v8 = vadd.f32 %v544_v26, %v540_v53  ;;  %v733_v12 = vadd.f32 %v669_v3, %v665_v5 }
 0x13e   :  { %v421_v13 = vpop.f32.mrf.mxu2  ;;  %v450_v14 = vpop.f32.mrf.mxu3  ;;  %v583_v9 = vadd.f32 %v582_v45, %v546_v44 }
 0x13f   :  { %v365_v22 = vpop.f32.mrf.mxu0  ;;  %v394_v58 = vpop.f32.mrf.mxu1  ;;  %v422_v20 = vadd.f32 %v421_v13, %v1088_v24  ;;  %v451_v33 = vadd.f32 %v450_v14, %v1088_v24  ;;  %v707_v24 = vadd.f32 %v667_v19, %v663_v17  ;;  %v570_v13 = vadd.f32 %v569_v23, %v545_v36 }
 0x140   :  { %v366_v2 = vadd.f32 %v365_v22, %v1098_v27  ;;  %v395_v31 = vadd.f32 %v394_v58, %v1098_v27  ;;  %v695_v14 = vadd.f32 %v694_v28, %v670_v40 }
 0x141   :  { %v475_v47 = vmax.f32 %v422_v20, 0.0  ;;  %v476_v4 = vmax.f32 %v451_v33, 0.0  ;;  %v708_v16 = vadd.f32 %v707_v24, %v671_v63 }
 0x142   :  { %v477_v10 = vmax.f32 %v366_v2, 0.0  ;;  %v478_v30 = vmax.f32 %v395_v31, 0.0 }
 0x143   :  { %v547_v43 = vmul.f32 %v1100_v32, %v475_v47  ;;  %v672_v15 = vmul.f32 %v1092_v25, %v475_v47  ;;  %v548_v54 = vmul.f32 %v1100_v32, %v476_v4  ;;  %v673_v59 = vmul.f32 %v1092_v25, %v476_v4 }
 0x144   :  { %v549_v46 = vmul.f32 %v1104_v35, %v477_v10  ;;  %v674_v17 = vmul.f32 %v1108_v56, %v477_v10  ;;  %v550_v52 = vmul.f32 %v1104_v35, %v478_v30  ;;  %v675_v53 = vmul.f32 %v1108_v56, %v478_v30  ;;  %v525_v30 = vpop.permute.xlu0 %524 }
 0x145   :  { %v596_v19 = vadd.f32 %v595_v49, %v547_v43  ;;  %v721_v1 = vadd.f32 %v720_v7, %v672_v15  ;;  %v609_v21 = vadd.f32 %v608_v8, %v548_v54  ;;  %v734_v23 = vadd.f32 %v733_v12, %v673_v59  ;;  %v1152_v54 = vpop.permute.xlu1 %659 }
 0x146   :  { %v423_v29 = vpop.f32.mrf.mxu2  ;;  %v452_v0 = vpop.f32.mrf.mxu3  ;;  %v696_v3 = vadd.f32 %v695_v14, %v674_v17  ;;  %v584_v31 = vadd.f32 %v583_v9, %v550_v52 }
 0x147   :  { %v368_v41 = vpop.f32.mrf.mxu0  ;;  %v397_v42 = vpop.f32.mrf.mxu1  ;;  %v424_v6 = vadd.f32 %v423_v29, %v1098_v27  ;;  %v453_v11 = vadd.f32 %v452_v0, %v1098_v27  ;;  %v571_v0 = vadd.f32 %v570_v13, %v549_v46 }
 0x148   :  { %v369_v22 = vadd.f32 %v368_v41, %v1090_v37  ;;  %v398_v58 = vadd.f32 %v397_v42, %v1090_v37  ;;  %v1142_v29 = vpop.permute.xlu2 %655  ;;  %v709_v41 = vadd.f32 %v708_v16, %v675_v53 }
 0x149   :  { %v479_v27 = vmax.f32 %v424_v6, 0.0  ;;  %v480_v50 = vmax.f32 %v453_v11, 0.0 }
 0x14a   :  { %v481_v20 = vmax.f32 %v369_v22, 0.0  ;;  %v482_v5 = vmax.f32 %v398_v58, 0.0 }
 0x14b   :  { %v551_v33 = vmul.f32 %v1104_v35, %v479_v27  ;;  %v676_v26 = vmul.f32 %v1108_v56, %v479_v27  ;;  %v552_v28 = vmul.f32 %v1104_v35, %v480_v50  ;;  %v677_v2 = vmul.f32 %v1108_v56, %v480_v50 }
 0x14c   :  { %v553_v42 = vmul.f32 %v520_v60, %v481_v20  ;;  %v554_v44 = vmul.f32 %v520_v60, %v482_v5  ;;  %v678_v24 = vmul.f32 %v1117_v48, %v481_v20  ;;  %v679_v47 = vmul.f32 %v1117_v48, %v482_v5 }
 0x14d   :  { %v597_v45 = vadd.f32 %v596_v19, %v551_v33  ;;  %v722_v49 = vadd.f32 %v721_v1, %v676_v26  ;;  %v610_v56 = vadd.f32 %v609_v21, %v552_v28  ;;  %v735_v63 = vadd.f32 %v734_v23, %v677_v2 }
 0x14e   :  { %v426_v18 = vpop.f32.mrf.mxu2  ;;  %v455_v51 = vpop.f32.mrf.mxu3  ;;  %v572_v9 = vadd.f32 %v571_v0, %v553_v42 }
 0x14f   :  { %v427_v32 = vadd.f32 %v426_v18, %v1090_v37  ;;  %v456_v25 = vadd.f32 %v455_v51, %v1090_v37  ;;  %v370_v55 = vpop.f32.mrf.mxu0  ;;  %v399_v57 = vpop.f32.mrf.mxu1  ;;  %v585_v18 = vadd.f32 %v584_v31, %v554_v44  ;;  %v697_v51 = vadd.f32 %v696_v3, %v678_v24 }
 0x150   :  { %v371_v39 = vadd.f32 %v370_v55, %v1094_v38  ;;  %v400_v37 = vadd.f32 %v399_v57, %v1094_v38  ;;  %v530_v55 = vpop.permute.xlu2 %529 }
 0x151   :  { %v483_v36 = vmax.f32 %v427_v32, 0.0  ;;  %v484_v40 = vmax.f32 %v456_v25, 0.0 }
 0x152   :  { %v485_v35 = vmax.f32 %v371_v39, 0.0  ;;  %v486_v4 = vmax.f32 %v400_v37, 0.0 }
 0x153   :  { %v555_v8 = vmul.f32 %v520_v60, %v483_v36  ;;  %v680_v10 = vmul.f32 %v1117_v48, %v483_v36  ;;  %v556_v11 = vmul.f32 %v520_v60, %v484_v40  ;;  %v681_v43 = vmul.f32 %v1117_v48, %v484_v40 }
 0x154   :  { %v557_v59 = vmul.f32 %v525_v30, %v485_v35  ;;  %v682_v27 = vmul.f32 %v1128_v61, %v485_v35  ;;  %v558_v16 = vmul.f32 %v525_v30, %v486_v4  ;;  %v683_v46 = vmul.f32 %v1128_v61, %v486_v4  ;;  %v535_v35 = vpop.permute.xlu1 %534 }
 0x155   :  { %v598_v48 = vadd.f32 %v597_v45, %v555_v8  ;;  %v723_v52 = vadd.f32 %v722_v49, %v680_v10  ;;  %v611_v53 = vadd.f32 %v610_v56, %v556_v11  ;;  %v736_v32 = vadd.f32 %v735_v63, %v681_v43 }
 0x156   :  { %v428_v6 = vpop.f32.mrf.mxu2  ;;  %v457_v7 = vpop.f32.mrf.mxu3  ;;  %v573_v57 = vadd.f32 %v572_v9, %v557_v59  ;;  %v698_v19 = vadd.f32 %v697_v51, %v682_v27  ;;  %v586_v5 = vadd.f32 %v585_v18, %v558_v16 }
 0x157   :  { %v429_v12 = vadd.f32 %v428_v6, %v1094_v38  ;;  %v373_v13 = vpop.f32.mrf.mxu0  ;;  %v402_v14 = vpop.f32.mrf.mxu1  ;;  %v458_v15 = vadd.f32 %v457_v7, %v1094_v38  ;;  %v710_v38 = vadd.f32 %v709_v41, %v679_v47 }
 0x158   :  { %v374_v22 = vadd.f32 %v373_v13, %v1102_v34  ;;  %v403_v58 = vadd.f32 %v402_v14, %v1102_v34 }
 0x159   :  { %v487_v60 = vmax.f32 %v429_v12, 0.0  ;;  %v488_v25 = vmax.f32 %v458_v15, 0.0  ;;  %v711_v21 = vadd.f32 %v710_v38, %v683_v46 }
 0x15a   :  { %v489_v17 = vmax.f32 %v374_v22, 0.0  ;;  %v490_v50 = vmax.f32 %v403_v58, 0.0 }
 0x15b   :  { %v559_v1 = vmul.f32 %v525_v30, %v487_v60  ;;  %v684_v20 = vmul.f32 %v1128_v61, %v487_v60  ;;  %v560_v40 = vmul.f32 %v525_v30, %v488_v25  ;;  %v685_v31 = vmul.f32 %v1128_v61, %v488_v25 }
 0x15c   :  { %v686_v23 = vmul.f32 %v1142_v29, %v489_v17  ;;  %v687_v33 = vmul.f32 %v1142_v29, %v490_v50  ;;  %v561_v28 = vmul.f32 %v530_v55, %v489_v17  ;;  %v562_v2 = vmul.f32 %v530_v55, %v490_v50 }
 0x15d   :  { %v599_v44 = vadd.f32 %v598_v48, %v559_v1  ;;  %v724_v45 = vadd.f32 %v723_v52, %v684_v20  ;;  %v612_v13 = vadd.f32 %v611_v53, %v560_v40  ;;  %v737_v14 = vadd.f32 %v736_v32, %v685_v31 }
 0x15e   :  { %v431_v39 = vpop.f32.mrf.mxu2  ;;  %v460_v26 = vpop.f32.mrf.mxu3  ;;  %v699_v49 = vadd.f32 %v698_v19, %v686_v23  ;;  %v712_v56 = vadd.f32 %v711_v21, %v687_v33  ;;  %v574_v7 = vadd.f32 %v573_v57, %v561_v28  ;;  %v587_v8 = vadd.f32 %v586_v5, %v562_v2 }
 0x15f   :  { %v432_v37 = vadd.f32 %v431_v39, %v1102_v34  ;;  %v461_v0 = vadd.f32 %v460_v26, %v1102_v34  ;;  %v375_v3 = vpop.f32.mrf.mxu0  ;;  %v404_v36 = vpop.f32.mrf.mxu1 }
 0x160   :  { %v376_v41 = vadd.f32 %v375_v3, %v1096_v62  ;;  %v405_v42 = vadd.f32 %v404_v36, %v1096_v62 }
 0x161   :  { %v491_v24 = vmax.f32 %v432_v37, 0.0  ;;  %v492_v47 = vmax.f32 %v461_v0, 0.0 }
 0x162   :  { %v493_v63 = vmax.f32 %v376_v41, 0.0  ;;  %v494_v4 = vmax.f32 %v405_v42, 0.0 }
 0x163   :  { %v563_v6 = vmul.f32 %v530_v55, %v491_v24  ;;  %v688_v34 = vmul.f32 %v1142_v29, %v491_v24  ;;  %v564_v30 = vmul.f32 %v530_v55, %v492_v47  ;;  %v689_v43 = vmul.f32 %v1142_v29, %v492_v47 }
 0x164   :  { %v690_v61 = vmul.f32 %v1152_v54, %v493_v63  ;;  %v691_v10 = vmul.f32 %v1152_v54, %v494_v4  ;;  %v565_v11 = vmul.f32 %v535_v35, %v493_v63  ;;  %v566_v12 = vmul.f32 %v535_v35, %v494_v4 }
 0x165   :  { %v600_v60 = vadd.f32 %v599_v44, %v563_v6  ;;  %v725_v16 = vadd.f32 %v724_v45, %v688_v34  ;;  %v613_v38 = vadd.f32 %v612_v13, %v564_v30  ;;  %v738_v52 = vadd.f32 %v737_v14, %v689_v43 }
 0x166   :  { %v700_v15 = vadd.f32 %v699_v49, %v690_v61  ;;  %v713_v22 = vadd.f32 %v712_v56, %v691_v10  ;;  %v575_v58 = vadd.f32 %v574_v7, %v565_v11  ;;  %v588_v9 = vadd.f32 %v587_v8, %v566_v12  ;;  %v433_v59 = vpop.f32.mrf.mxu2  ;;  %v462_v27 = vpop.f32.mrf.mxu3 }
 0x167   :  { %v434_v46 = vadd.f32 %v433_v59, %v1096_v62  ;;  %v463_v17 = vadd.f32 %v462_v27, %v1096_v62  ;;  %v624_v61 = vpop.permute.xlu2 %623 }
 0x168   :  { %v701_v50 = vrot.slane %v700_v15, 4  ;;  %v714_v18 = vrot.slane %v713_v22, 4  ;;  %v576_v48 = vrot.slane %v575_v58, 4  ;;  %v589_v51 = vrot.slane %v588_v9, 4 }
 0x169   :  { %v495_v53 = vmax.f32 %v434_v46, 0.0  ;;  %v496_v29 = vmax.f32 %v463_v17, 0.0 }
 0x16a   :  { %v702_v32 = vadd.f32 %v701_v50, %v700_v15  ;;  %v715_v25 = vadd.f32 %v714_v18, %v713_v22  ;;  %v577_v55 = vadd.f32 %v576_v48, %v575_v58  ;;  %v590_v57 = vadd.f32 %v589_v51, %v588_v9 }
 0x16b   :  { %v567_v19 = vmul.f32 %v535_v35, %v495_v53  ;;  %v692_v1 = vmul.f32 %v1152_v54, %v495_v53  ;;  %v568_v20 = vmul.f32 %v535_v35, %v496_v29  ;;  %v693_v5 = vmul.f32 %v1152_v54, %v496_v29 }
 0x16c   :  { %v703_v21 = vrot.slane %v702_v32, 2  ;;  %v716_v62 = vrot.slane %v715_v25, 2  ;;  %v578_v23 = vrot.slane %v577_v55, 2  ;;  %v591_v33 = vrot.slane %v590_v57, 2 }
 0x16d   :  { %v601_v39 = vadd.f32 %v600_v60, %v567_v19  ;;  %v726_v26 = vadd.f32 %v725_v16, %v692_v1  ;;  %v614_v28 = vadd.f32 %v613_v38, %v568_v20  ;;  %v739_v2 = vadd.f32 %v738_v52, %v693_v5 }
 0x16e   :  { %v704_v37 = vadd.f32 %v703_v21, %v702_v32  ;;  %v717_v0 = vadd.f32 %v716_v62, %v715_v25  ;;  %v592_v3 = vadd.f32 %v591_v33, %v590_v57  ;;  %v579_v45 = vadd.f32 %v578_v23, %v577_v55 }
 0x16f   :  { %v602_v36 = vrot.slane %v601_v39, 4  ;;  %v727_v40 = vrot.slane %v726_v26, 4  ;;  %v615_v31 = vrot.slane %v614_v28, 4  ;;  %v740_v41 = vrot.slane %v739_v2, 4 }
 0x170   :  { %v705_v42 = vrot.slane %v704_v37, 1  ;;  %v718_v44 = vrot.slane %v717_v0, 1  ;;  %v593_v24 = vrot.slane %v592_v3, 1  ;;  %v580_v10 = vrot.slane %v579_v45, 1 }
 0x171   :  { %v603_v54 = vadd.f32 %v602_v36, %v601_v39  ;;  %v728_v47 = vadd.f32 %v727_v40, %v726_v26  ;;  %v616_v35 = vadd.f32 %v615_v31, %v614_v28  ;;  %v741_v49 = vadd.f32 %v740_v41, %v739_v2 }
 0x172   :  { %v706_v56 = vadd.f32 %v705_v42, %v704_v37  ;;  %v719_v63 = vadd.f32 %v718_v44, %v717_v0  ;;  %v594_v4 = vadd.f32 %v593_v24, %v592_v3  ;;  %v581_v27 = vadd.f32 %v580_v10, %v579_v45 }
 0x173   :  { %v604_v6 = vrot.slane %v603_v54, 2  ;;  %v729_v34 = vrot.slane %v728_v47, 2  ;;  %v617_v7 = vrot.slane %v616_v35, 2  ;;  %v742_v8 = vrot.slane %v741_v49, 2 }
 0x174   :  { %v746_v11 = vadd.f32 %v706_v56, %v624_v61  ;;  %v747_v12 = vadd.f32 %v719_v63, %v624_v61  ;;  %v627_v15 = vadd.f32 %v624_v61, %v594_v4  ;;  %v764_v50 = vlaneseq }
 0x175   :  { %v605_v13 = vadd.f32 %v604_v6, %v603_v54  ;;  %v730_v14 = vadd.f32 %v729_v34, %v728_v47  ;;  %v618_v30 = vadd.f32 %v617_v7, %v616_v35  ;;  %v743_v43 = vadd.f32 %v742_v8, %v741_v49 }
 0x176   :  { %773 = vst [vmem:[#allocation1] sm:$0xff] %v746_v11  ;;  %v754_v18 = vrot.slane %v627_v15, 7  ;;  %v626_v53 = vadd.f32 %v624_v61, %v581_v27  ;;  %vm766_vm4 = vcmp.lt.s32.totalorder %v764_v50, 512 }
 0x177   :  { %v606_v22 = vrot.slane %v605_v13, 1  ;;  %v731_v58 = vrot.slane %v730_v14, 1  ;;  %v619_v9 = vrot.slane %v618_v30, 1  ;;  %v744_v59 = vrot.slane %v743_v43, 1  ;;  %774 = vst [vmem:[#allocation1 + $0x9] sm:$0xff] %v747_v12 }
 0x178   :  { %v758_v25 = vsel %vm757_vm1, %v626_v53, %v754_v18 }
 0x179   :  { %v607_v60 = vadd.f32 %v606_v22, %v605_v13  ;;  %v732_v16 = vadd.f32 %v731_v58, %v730_v14  ;;  %v620_v46 = vadd.f32 %v619_v9, %v618_v30  ;;  %v745_v17 = vadd.f32 %v744_v59, %v743_v43 }
 0x17b   :  { %v628_v48 = vadd.f32 %v624_v61, %v607_v60  ;;  %v629_v51 = vadd.f32 %v624_v61, %v620_v46  ;;  %v748_v38 = vadd.f32 %v732_v16, %v624_v61  ;;  %v749_v52 = vadd.f32 %v745_v17, %v624_v61 }
 0x17d   :  { %v755_v29 = vrot.slane %v628_v48, 6  ;;  %v756_v32 = vrot.slane %v629_v51, 5  ;;  %775 = vst [vmem:[#allocation1 + $0x12] sm:$0xff] %v748_v38 }
 0x17e   :  { %776 = vst [vmem:[#allocation1 + $0x1b] sm:$0xff] %v749_v52 }
 0x17f   :  { %v760_v55 = vsel %vm759_vm2, %v755_v29, %v756_v32 }
 0x180   :  { %v762_v57 = vsel %vm761_vm3, %v758_v25, %v760_v55 }
 0x181   :  { %768 = vst.msk [vmem:[%s1185_s7] ss:$2 sm:$0xf] %vm766_vm4, %v762_v57 }
 0x185   :  { %v778_v19 = vld [vmem:[#allocation1 + $0x1] ss:$9 sm:$0xff] }
 0x186   :  { %802 = vst.msk [vmem:[%s1185_s7 + $0x1] ss:$2 sm:$0xf] %vm766_vm4, %v778_v19 }

</bundles_post_ra>
